<compile_context>
chip_gen: v7x
topology: tpu7x:2x2x1
jax: 0.10.0
libtpu: 0.0.40
codegen_flags: <defaults>
</compile_context>

<pallas_src>
import jax
import jax.numpy as jnp
from jax.experimental import pallas as pl
from jax.experimental.pallas import tpu as pltpu

_SUBLANES = 8            # f32 sublane count per vreg
_MAX_BLOCK_ROWS = 4096   # ~2 MiB lane-padded f32 VMEM tile per buffer
_SPLIT_THRESHOLD = 2048  # only split into >=2 blocks when each stays >= ~1024 rows


def _round_up(n: int, m: int) -> int:
    return ((n + m - 1) // m) * m


def _constant_fill_kernel(param_ref, out_ref):
    # param_ref: (1,) scalar parameter in SMEM
    # out_ref:   (block_rows, 1) output tile in VMEM
    # Pure broadcast fill; the ones-tensor + multiply of the PyTorch forward is
    # folded into a single vector fill of the output tile.
    out_ref[...] = jnp.full(out_ref.shape, param_ref[0], dtype=out_ref.dtype)


def dummy_model_forward(x: jax.Array, dummy_param: jax.Array) -> jax.Array:
    """Pallas equivalent of DummyModel.forward.

    Args:
      x:           any array; only x.shape[0] (batch) is used.
      dummy_param: scalar float32 parameter (the nn.Parameter).

    Returns:
      (batch, 1) float32 array filled with dummy_param.
    """
    batch = x.shape[0]
    if batch == 0:
        # Degenerate batch: match PyTorch's empty (0, 1) result, no kernel launch.
        return jnp.zeros((0, 1), jnp.float32)

    # Scalar parameter (PyTorch 0-d nn.Parameter) travels through SMEM as f32[1].
    param = jnp.reshape(jnp.asarray(dummy_param, dtype=jnp.float32), (1,))

    if batch >= _SPLIT_THRESHOLD:
        # Large fills: >=2 blocks so v7x's two TensorCores can split the HBM
        # writeback (no-op on single-TC v5e/v6e), capped at _MAX_BLOCK_ROWS.
        block_rows = min(_MAX_BLOCK_ROWS, _round_up(pl.cdiv(batch, 2), _SUBLANES))
    else:
        # Small/moderate batch: one block covering the whole output
        # (block == full array dims, so any batch size is legal).
        block_rows = batch
    grid_rows = pl.cdiv(batch, block_rows)

    return pl.pallas_call(
        _constant_fill_kernel,
        out_shape=jax.ShapeDtypeStruct((batch, 1), jnp.float32),
        grid=(grid_rows,),
        in_specs=[pl.BlockSpec(memory_space=pltpu.SMEM)],
        out_specs=pl.BlockSpec((block_rows, 1), lambda i: (i, 0)),
        compiler_params=pltpu.CompilerParams(
            # Shard the fill across v7x's 2 TensorCores when grid_rows > 1;
            # measured no-op on single-TC v5e/v6e but harmless.
            dimension_semantics=("parallel",),
        ),
    )(param)


if __name__ == "__main__":
    key = jax.random.PRNGKey(0)
    # Small NCHW input consistent with a typical training batch fed to DummyModel.
    x = jax.random.normal(key, (2, 4, 16, 16), dtype=jnp.float32)

    constant_value = 0.5
    dummy_param = jnp.asarray(constant_value, dtype=jnp.float32)

    out = dummy_model_forward(x, dummy_param)
    out = jax.block_until_ready(out)

    # Reference check against the PyTorch semantics.
    expected = constant_value * jnp.ones((x.shape[0], 1), dtype=jnp.float32)
    assert out.shape == (x.shape[0], 1), out.shape
    assert out.dtype == jnp.float32, out.dtype
    assert bool(jnp.allclose(out, expected)), (out, expected)

    print("KERNEL_OK")
</pallas_src>

<mosaic_0001>
module attributes {stable_mosaic.version = 11 : i64} {
  func.func @_constant_fill_kernel(%arg0: i32, %arg1: memref<1xf32, #tpu.memory_space<smem>>, %arg2: memref<2x1xf32, #tpu.memory_space<vmem>>) attributes {dimension_semantics = [#tpu.dimension_semantics<parallel>], iteration_bounds = array<i64: 1>, scalar_prefetch = 0 : i64, scratch_operands = 0 : i64, tpu.core_type = #tpu.core_type<tc>, window_params = [{transform_indices = @transform_0, window_bounds = array<i64: 1>}, {transform_indices = @transform_1, window_bounds = array<i64: 2, 1>}]} {
    %c0 = arith.constant 0 : index
    %0 = memref.load %arg1[%c0] : memref<1xf32, #tpu.memory_space<smem>>
    %1 = vector.broadcast %0 : f32 to vector<2x1xf32>
    %c0_0 = arith.constant 0 : index
    %c0_1 = arith.constant 0 : index
    %2 = vector.load %arg2[%c0_0, %c0_1] : memref<2x1xf32, #tpu.memory_space<vmem>>, vector<2x1xf32>
    tpu.vector_store %arg2[%c0_0, %c0_1], %1 {strides = array<i32>} : memref<2x1xf32, #tpu.memory_space<vmem>>, vector<2x1xf32>,
    return
  }
  func.func @transform_0(%arg0: i32) -> i32 {
    %c0_i32 = arith.constant 0 : i32
    %c0_i32_0 = arith.constant 0 : i32
    return %c0_i32 : i32
  }
  func.func @transform_1(%arg0: i32) -> (i32, i32) {
    %c0_i32 = arith.constant 0 : i32
    %c0_i32_0 = arith.constant 0 : i32
    return %arg0, %c0_i32 : i32, i32
  }
}

</mosaic_0001>

<bundles_post_ra>
// kernel: tpu_custom_call.1
= control target key start
LH: loop header
LB: loop body
LE: loop exit
PB: predicated region body
PF: predicated region fallthrough
CT: control target
= control target key end

     0   :  { %vm11_vm0 = vcmask 1024   ;;  %s33_s0 = inlined_call_operand.<no memory space> [shape: f32[1], index: 0, kind: input, shape index: {}]   ;;  %s34_s1 = inlined_call_operand.vmem [shape: f32[2,1], index: 1, kind: output, shape index: {}]  }
   0x1   :  { %v10_v0 = vstv %s33_s0 }
   0x2   :  { %12 = vst.msk [vmem:[%s34_s1] sm:$0x3] %vm11_vm0, %v10_v0 }

</bundles_post_ra>
